<compile_context>
chip_gen: v6e
topology: v6e:2x2x1
jax: 0.10.0
libtpu: 0.0.40
codegen_flags: <defaults>
</compile_context>

<pallas_src>
import jax
import jax.numpy as jnp
from jax.experimental import pallas as pl
from jax.experimental.pallas import tpu as pltpu

IGNORE_INDEX = -100


def _round_up(x, m):
    return (x + m - 1) // m * m


def _pool_project_kernel(batch_ref, x_ref, w1_ref, b1_ref, w2_ref, b2_ref, out_ref):
    """One row-tile of graphs: in-VMEM one-hot, scatter-mean pool, 2-layer MLP."""
    tile_m = out_ref.shape[0]
    n = x_ref.shape[0]
    row0 = pl.program_id(0) * tile_m

    # graph id of each output row in this tile, broadcast over the node axis
    gids = row0 + jax.lax.broadcasted_iota(jnp.int32, (tile_m, n), 0)
    onehot = (batch_ref[...] == gids)                                # [tile_m, n]
    counts = jnp.sum(onehot.astype(jnp.float32), axis=1, keepdims=True)

    # scatter(..., reduce='mean'): one-hot @ node_x (bf16 MXU, f32 accumulate)
    pooled = jnp.dot(onehot.astype(jnp.bfloat16), x_ref[...],
                     preferred_element_type=jnp.float32)             # [tile_m, H]
    pooled = pooled / jnp.maximum(counts, 1.0)

    # projector: Linear -> Sigmoid -> Linear (bf16 inputs, f32 accumulation)
    h = jnp.dot(pooled.astype(jnp.bfloat16), w1_ref[...],
                preferred_element_type=jnp.float32) + b1_ref[...]    # [tile_m, P]
    h = jax.nn.sigmoid(h)
    y = jnp.dot(h.astype(jnp.bfloat16), w2_ref[...],
                preferred_element_type=jnp.float32) + b2_ref[...]    # [tile_m, E]
    out_ref[...] = y.astype(out_ref.dtype)


def pool_and_project_fused(claim_x, claim_batch, doc_x, doc_batch, num_graphs,
                           w1, b1, w2, b2):
    """Fused claim+doc segment-mean pooling + projector in a single pallas_call.

    Returns (claim_embeds, doc_embeds), each [num_graphs, embed_dim] float32.
    """
    h = claim_x.shape[1]
    p = w1.shape[1]
    e = w2.shape[1]

    # Fuse the two graph batches: one node array, doc graph ids offset by B.
    node_x = jnp.concatenate([claim_x, doc_x], axis=0)
    batch_vec = jnp.concatenate(
        [claim_batch.astype(jnp.int32),
         doc_batch.astype(jnp.int32) + num_graphs], axis=0)

    n_total = node_x.shape[0]
    n_pad = max(_round_up(n_total, 128), 128)       # lane-dense node axis
    b_total = 2 * num_graphs
    tile_m = min(_round_up(b_total, 8), 256)        # sublane-aligned row tile
    b_pad = _round_up(b_total, tile_m)

    # Pad nodes with zeros and assignment vector with -1 (matches no graph).
    node_x_p = jnp.zeros((n_pad, h), jnp.bfloat16).at[:n_total].set(
        node_x.astype(jnp.bfloat16))
    batch_p = jnp.full((1, n_pad), -1, jnp.int32).at[0, :n_total].set(batch_vec)

    w1b = w1.astype(jnp.bfloat16)
    w2b = w2.astype(jnp.bfloat16)
    b1f = b1.reshape(1, p).astype(jnp.float32)
    b2f = b2.reshape(1, e).astype(jnp.float32)

    # Constant index_map -> these stay VMEM-resident across all row tiles.
    def const(shape):
        return pl.BlockSpec(shape, lambda i: (0, 0))

    out = pl.pallas_call(
        _pool_project_kernel,
        out_shape=jax.ShapeDtypeStruct((b_pad, e), jnp.float32),
        grid=(b_pad // tile_m,),
        in_specs=[const((1, n_pad)),      # int32 graph-assignment vector
                  const((n_pad, h)),      # bf16 node embeddings
                  const((h, p)), const((1, p)),
                  const((p, e)), const((1, e))],
        out_specs=pl.BlockSpec((tile_m, e), lambda i: (i, 0)),
        compiler_params=pltpu.CompilerParams(
            dimension_semantics=("parallel",)),     # both v7x TCs split rows
    )(batch_p, node_x_p, w1b, b1f, w2b, b2f)

    return out[:num_graphs], out[num_graphs:b_total]


def _ref_pool_project(node_x, batch_vec, num_graphs, w1, b1, w2, b2):
    """Pure-JAX f32 reference: torch_scatter mean + projector."""
    onehot = (batch_vec[None, :] == jnp.arange(num_graphs)[:, None]).astype(jnp.float32)
    counts = jnp.maximum(onehot.sum(axis=1, keepdims=True), 1.0)
    pooled = (onehot @ node_x.astype(jnp.float32)) / counts
    hh = jax.nn.sigmoid(pooled @ w1 + b1)
    return hh @ w2 + b2


if __name__ == "__main__":
    key = jax.random.PRNGKey(0)

    # small shapes consistent with the module's forward
    B = 2                 # batch size (len(data['id']))
    GNN_HID = 32          # args.gnn_hidden_dim  (pick a multiple of 128 in prod)
    PROJ_HID = 2048       # hardcoded nn.Linear(gnn_hidden_dim, 2048)
    EMBED = 128           # word_embedding.weight.shape[1]
    VOCAB = 256
    MAX_TXT_LEN = 8       # args.max_txt_len
    MAX_NEW_TOKENS = 4    # args.max_new_tokens

    ks = jax.random.split(key, 6)

    # TODO(synk): the GNN graph encoder (load_gnn_model[args.gnn_model_name]) is
    # an external message-passing network; its node outputs are stood in for by
    # the node features directly.
    N_CLAIM = 16          # total claim-KG nodes in the batch
    N_DOC = 24            # total doc-KG nodes in the batch
    claim_x = jax.random.normal(ks[0], (N_CLAIM, GNN_HID), jnp.float32)
    doc_x = jax.random.normal(ks[1], (N_DOC, GNN_HID), jnp.float32)
    # explicit (possibly uneven) per-graph node counts — no N//B truncation
    claim_batch = jnp.concatenate([jnp.full((7,), 0, jnp.int32),
                                   jnp.full((9,), 1, jnp.int32)])
    doc_batch = jnp.concatenate([jnp.full((13,), 0, jnp.int32),
                                 jnp.full((11,), 1, jnp.int32)])

    # projector parameters (deterministic init)
    w1 = jax.random.normal(ks[2], (GNN_HID, PROJ_HID), jnp.float32) * 0.02
    b1 = jnp.zeros((1, PROJ_HID), jnp.float32)
    w2 = jax.random.normal(ks[3], (PROJ_HID, EMBED), jnp.float32) * 0.02
    b2 = jnp.zeros((1, EMBED), jnp.float32)

    # frozen word-embedding table
    emb_table = jax.random.normal(ks[4], (VOCAB, EMBED), jnp.float32) * 0.02

    # --- Pallas hot path: fused claim+doc pooling + projector (one call) ---
    claim_embeds, doc_embeds = pool_and_project_fused(
        claim_x, claim_batch, doc_x, doc_batch, B, w1, b1, w2, b2)

    # correctness check vs f32 reference (relaxed tol: bf16 weights/activations)
    ref_claim = _ref_pool_project(claim_x, claim_batch, B, w1, b1, w2, b2)
    ref_doc = _ref_pool_project(doc_x, doc_batch, B, w1, b1, w2, b2)
    err = max(float(jnp.max(jnp.abs(claim_embeds - ref_claim))),
              float(jnp.max(jnp.abs(doc_embeds - ref_doc))))
    assert err < 0.05, f"kernel mismatch vs reference: max abs err {err}"

    # --- plain-JAX glue: tokenizer ids (synthetic) + sequence assembly ---
    PAD_ID = 0
    bos_ids = [1, 2, 3]            # '<s>[INST]'
    eos_ids = [5]                  # '</s>'
    eos_user_ids = [4]             # '[/INST]'
    text_ids = [[10, 11, 12, 13, 14, 15, 16, 17, 18, 19],
                [20, 21, 22, 23, 24]]
    label_ids = [[30, 31], [40, 41, 42]]

    def embed(ids):
        return jnp.take(emb_table, jnp.asarray(ids, jnp.int32), axis=0)

    bos_embeds = embed(bos_ids)          # [3, EMBED]
    pad_embeds = embed([PAD_ID])         # [1, EMBED]

    batch_inputs_embeds, batch_attention_mask, batch_label_input_ids = [], [], []
    for i in range(B):
        lab = label_ids[i][:MAX_NEW_TOKENS] + eos_ids
        inp = text_ids[i][:MAX_TXT_LEN] + eos_user_ids + lab
        inputs_embeds_i = embed(inp)
        inputs_embeds_i = jnp.concatenate(
            [bos_embeds,
             claim_embeds[i][None, :],
             doc_embeds[i][None, :],
             inputs_embeds_i], axis=0)
        batch_inputs_embeds.append(inputs_embeds_i)
        batch_attention_mask.append([1] * inputs_embeds_i.shape[0])
        lab_full = [IGNORE_INDEX] * (inputs_embeds_i.shape[0] - len(lab)) + lab
        batch_label_input_ids.append(lab_full)

    max_length = max(x.shape[0] for x in batch_inputs_embeds)
    for i in range(B):
        pad_len = max_length - batch_inputs_embeds[i].shape[0]
        batch_inputs_embeds[i] = jnp.concatenate(
            [jnp.tile(pad_embeds, (pad_len, 1)), batch_inputs_embeds[i]], axis=0)
        batch_attention_mask[i] = [0] * pad_len + batch_attention_mask[i]
        batch_label_input_ids[i] = [IGNORE_INDEX] * pad_len + batch_label_input_ids[i]

    inputs_embeds = jnp.stack(batch_inputs_embeds, axis=0)         # [B, L, EMBED]
    attention_mask = jnp.asarray(batch_attention_mask, jnp.int32)   # [B, L]
    label_input_ids = jnp.asarray(batch_label_input_ids, jnp.int32)

    # TODO(synk): the frozen HF causal LM (self.model(inputs_embeds=..., labels=...))
    # and its cross-entropy loss are external and not reimplemented; the tensors
    # above are the module's exact hand-off point to the LLM.

    jax.block_until_ready((claim_embeds, doc_embeds,
                           inputs_embeds, attention_mask, label_input_ids))
    print("KERNEL_OK")
</pallas_src>

<mosaic_0001>
module attributes {stable_mosaic.version = 11 : i64} {
  func.func @_pool_project_kernel(%arg0: i32, %arg1: memref<1x128xi32, #tpu.memory_space<vmem>>, %arg2: memref<128x32xbf16, #tpu.memory_space<vmem>>, %arg3: memref<32x2048xbf16, #tpu.memory_space<vmem>>, %arg4: memref<1x2048xf32, #tpu.memory_space<vmem>>, %arg5: memref<2048x128xbf16, #tpu.memory_space<vmem>>, %arg6: memref<1x128xf32, #tpu.memory_space<vmem>>, %arg7: memref<8x128xf32, #tpu.memory_space<vmem>>) attributes {dimension_semantics = [#tpu.dimension_semantics<parallel>], iteration_bounds = array<i64: 1>, scalar_prefetch = 0 : i64, scratch_operands = 0 : i64, tpu.core_type = #tpu.core_type<tc>, window_params = [{pipeline_mode = #tpu.pipeline_mode<synchronous>, transform_indices = @transform_0, window_bounds = array<i64: 1, 128>}, {pipeline_mode = #tpu.pipeline_mode<synchronous>, transform_indices = @transform_1, window_bounds = array<i64: 128, 32>}, {pipeline_mode = #tpu.pipeline_mode<synchronous>, transform_indices = @transform_2, window_bounds = array<i64: 32, 2048>}, {pipeline_mode = #tpu.pipeline_mode<synchronous>, transform_indices = @transform_3, window_bounds = array<i64: 1, 2048>}, {pipeline_mode = #tpu.pipeline_mode<synchronous>, transform_indices = @transform_4, window_bounds = array<i64: 2048, 128>}, {pipeline_mode = #tpu.pipeline_mode<synchronous>, transform_indices = @transform_5, window_bounds = array<i64: 1, 128>}, {transform_indices = @transform_6, window_bounds = array<i64: 8, 128>}]} {
    %c8_i32 = arith.constant 8 : i32
    %0 = arith.muli %arg0, %c8_i32 : i32
    %1 = tpu.iota {dimensions = array<i32: 0>} : vector<8x128xi32>
    %2 = vector.broadcast %0 : i32 to vector<8x128xi32>
    %3 = arith.addi %2, %1 : vector<8x128xi32>
    %c0 = arith.constant 0 : index
    %c0_0 = arith.constant 0 : index
    %4 = vector.load %arg1[%c0, %c0_0] : memref<1x128xi32, #tpu.memory_space<vmem>>, vector<1x128xi32>
    %5 = vector.broadcast %4 : vector<1x128xi32> to vector<8x128xi32>
    %6 = arith.cmpi eq, %5, %3 : vector<8x128xi32>
    %7 = arith.extui %6 : vector<8x128xi1> to vector<8x128xi32>
    %8 = arith.sitofp %7 : vector<8x128xi32> to vector<8x128xf32>
    %cst = arith.constant dense<0.000000e+00> : vector<8xf32>
    %9 = vector.multi_reduction <add>, %8, %cst [1] : vector<8x128xf32> to vector<8xf32>
    %10 = vector.shape_cast %9 : vector<8xf32> to vector<8x1xf32>
    %11 = arith.extui %6 : vector<8x128xi1> to vector<8x128xi32>
    %12 = arith.sitofp %11 : vector<8x128xi32> to vector<8x128xf32>
    %13 = arith.truncf %12 : vector<8x128xf32> to vector<8x128xbf16>
    %c0_1 = arith.constant 0 : index
    %c0_2 = arith.constant 0 : index
    %14 = vector.load %arg2[%c0_1, %c0_2] : memref<128x32xbf16, #tpu.memory_space<vmem>>, vector<128x32xbf16>
    %cst_3 = arith.constant dense<0.000000e+00> : vector<8x32xf32>
    %15 = tpu.matmul %13, %14, %cst_3 {dimension_numbers = #tpu.dot_dimension_numbers<[1], [0], [0], [1], [0, 0, 1, 1], [], []>} : vector<8x128xbf16>, vector<128x32xbf16>, vector<8x32xf32> -> vector<8x32xf32>
    %cst_4 = arith.constant 1.000000e+00 : f32
    %16 = vector.broadcast %cst_4 : f32 to vector<8x1xf32>
    %17 = arith.maximumf %10, %16 : vector<8x1xf32>
    %18 = vector.broadcast %17 : vector<8x1xf32> to vector<8x32xf32>
    %19 = arith.divf %15, %18 : vector<8x32xf32>
    %20 = arith.truncf %19 : vector<8x32xf32> to vector<8x32xbf16>
    %c0_5 = arith.constant 0 : index
    %c0_6 = arith.constant 0 : index
    %21 = vector.load %arg3[%c0_5, %c0_6] : memref<32x2048xbf16, #tpu.memory_space<vmem>>, vector<32x2048xbf16>
    %cst_7 = arith.constant dense<0.000000e+00> : vector<8x2048xf32>
    %22 = tpu.matmul %20, %21, %cst_7 {dimension_numbers = #tpu.dot_dimension_numbers<[1], [0], [0], [1], [0, 0, 1, 1], [], []>} : vector<8x32xbf16>, vector<32x2048xbf16>, vector<8x2048xf32> -> vector<8x2048xf32>
    %c0_8 = arith.constant 0 : index
    %c0_9 = arith.constant 0 : index
    %23 = vector.load %arg4[%c0_8, %c0_9] : memref<1x2048xf32, #tpu.memory_space<vmem>>, vector<1x2048xf32>
    %24 = vector.broadcast %23 : vector<1x2048xf32> to vector<8x2048xf32>
    %25 = arith.addf %22, %24 : vector<8x2048xf32>
    %26 = arith.negf %25 : vector<8x2048xf32>
    %27 = math.exp %26 : vector<8x2048xf32>
    %cst_10 = arith.constant 1.000000e+00 : f32
    %28 = vector.broadcast %cst_10 : f32 to vector<8x2048xf32>
    %29 = arith.addf %28, %27 : vector<8x2048xf32>
    %30 = arith.divf %28, %29 : vector<8x2048xf32>
    %31 = arith.truncf %30 : vector<8x2048xf32> to vector<8x2048xbf16>
    %c0_11 = arith.constant 0 : index
    %c0_12 = arith.constant 0 : index
    %32 = vector.load %arg5[%c0_11, %c0_12] : memref<2048x128xbf16, #tpu.memory_space<vmem>>, vector<2048x128xbf16>
    %cst_13 = arith.constant dense<0.000000e+00> : vector<8x128xf32>
    %33 = tpu.matmul %31, %32, %cst_13 {dimension_numbers = #tpu.dot_dimension_numbers<[1], [0], [0], [1], [0, 0, 1, 1], [], []>} : vector<8x2048xbf16>, vector<2048x128xbf16>, vector<8x128xf32> -> vector<8x128xf32>
    %c0_14 = arith.constant 0 : index
    %c0_15 = arith.constant 0 : index
    %34 = vector.load %arg6[%c0_14, %c0_15] : memref<1x128xf32, #tpu.memory_space<vmem>>, vector<1x128xf32>
    %35 = vector.broadcast %34 : vector<1x128xf32> to vector<8x128xf32>
    %36 = arith.addf %33, %35 : vector<8x128xf32>
    %c0_16 = arith.constant 0 : index
    %c0_17 = arith.constant 0 : index
    %37 = vector.load %arg7[%c0_16, %c0_17] : memref<8x128xf32, #tpu.memory_space<vmem>>, vector<8x128xf32>
    tpu.vector_store %arg7[%c0_16, %c0_17], %36 {strides = array<i32>} : memref<8x128xf32, #tpu.memory_space<vmem>>, vector<8x128xf32>,
    return
  }
  func.func @transform_0(%arg0: i32) -> (i32, i32) {
    %c0_i32 = arith.constant 0 : i32
    %c0_i32_0 = arith.constant 0 : i32
    %c0_i32_1 = arith.constant 0 : i32
    return %c0_i32, %c0_i32_0 : i32, i32
  }
  func.func @transform_1(%arg0: i32) -> (i32, i32) {
    %c0_i32 = arith.constant 0 : i32
    %c0_i32_0 = arith.constant 0 : i32
    %c0_i32_1 = arith.constant 0 : i32
    return %c0_i32, %c0_i32_0 : i32, i32
  }
  func.func @transform_2(%arg0: i32) -> (i32, i32) {
    %c0_i32 = arith.constant 0 : i32
    %c0_i32_0 = arith.constant 0 : i32
    %c0_i32_1 = arith.constant 0 : i32
    return %c0_i32, %c0_i32_0 : i32, i32
  }
  func.func @transform_3(%arg0: i32) -> (i32, i32) {
    %c0_i32 = arith.constant 0 : i32
    %c0_i32_0 = arith.constant 0 : i32
    %c0_i32_1 = arith.constant 0 : i32
    return %c0_i32, %c0_i32_0 : i32, i32
  }
  func.func @transform_4(%arg0: i32) -> (i32, i32) {
    %c0_i32 = arith.constant 0 : i32
    %c0_i32_0 = arith.constant 0 : i32
    %c0_i32_1 = arith.constant 0 : i32
    return %c0_i32, %c0_i32_0 : i32, i32
  }
  func.func @transform_5(%arg0: i32) -> (i32, i32) {
    %c0_i32 = arith.constant 0 : i32
    %c0_i32_0 = arith.constant 0 : i32
    %c0_i32_1 = arith.constant 0 : i32
    return %c0_i32, %c0_i32_0 : i32, i32
  }
  func.func @transform_6(%arg0: i32) -> (i32, i32) {
    %c0_i32 = arith.constant 0 : i32
    %c0_i32_0 = arith.constant 0 : i32
    return %arg0, %c0_i32 : i32, i32
  }
}

</mosaic_0001>

<bundles_post_ra>
// kernel: tpu_custom_call.1
= control target key start
LH: loop header
LB: loop body
LE: loop exit
PB: predicated region body
PF: predicated region fallthrough
CT: control target
= control target key end

     0   :  { %11 = vsyncpa [#allocation3], 0  ;;  %s3139_s0 = inlined_call_operand.vmem [shape: s32[1,128], index: 0, kind: input, shape index: {}]   ;;  %s3140_s1 = inlined_call_operand.vmem [shape: bf16[128,32], index: 1, kind: input, shape index: {}]   ;;  %s3141_s2 = inlined_call_operand.hbm [shape: bf16[32,2048], index: 2, kind: input, shape index: {}]   ;;  %s3142_s3 = inlined_call_operand.vmem [shape: f32[1,2048], index: 3, kind: input, shape index: {}]   ;;  %s3143_s4 = inlined_call_operand.hbm [shape: bf16[2048,128], index: 4, kind: input, shape index: {}]   ;;  %s3144_s5 = inlined_call_operand.vmem [shape: f32[1,128], index: 5, kind: input, shape index: {}]   ;;  %s3145_s6 = inlined_call_operand.hbm [shape: f32[8,128], index: 6, kind: output, shape index: {}]  }
   0x1   :  { %12 = vsyncpa [#allocation6], 0 }
   0x2   :  { %13 = vsyncpa [#allocation4], 0  ;;  %s2945_s21 = smov [#allocation2]  }
   0x3   :  { %s23_s22 = sshll.u32 %s2945_s21, 4  ;;  %s24_s22 = int_to_ptr.vmem [resolvable:$true] %s23_s22 }
   0x4   :  { %s2887_s23 = scalar_lea.vmem %s24_s22, 4096  ;;  %p2892_p1 = scmp.lt.s32.totalorder %s24_s22, %s24_s22 }
   0x5   :  { %p2888_p0 = scmp.ne.s32.totalorder %s24_s22, %s2887_s23  ;;  %p2893_p2 = scmp.lt.s32.totalorder %s2887_s23, %s2887_s23 }
   0x7   :  { %p2894_p3 = por %p2893_p2, %p2892_p1 }
   0x9   :  { %p2895_p4 = pnand %p2894_p3, %p2888_p0 }
   0xb   :  { %2898 = shalt.err (!%p2895_p4)
}
   0xc   :  { %s2946_s24 = smov 1024   ;;  %s2947_s25 = smov 64  }
   0xd   :  { %29 = dma.hbm_to_vmem [thread:$0]  %s3141_s2, 4096, %s24_s22, [#allocation3], %s2946_s24, %s2946_s24, %s2947_s25  }
   0xe   :  { %s2948_s28 = smov [#allocation5]  }
   0xf   :  { %s37_s29 = sshll.u32 %s2948_s28, 4  ;;  %s38_s29 = int_to_ptr.vmem [resolvable:$true] %s37_s29 }
  0x10   :  { %s2907_s30 = scalar_lea.vmem %s38_s29, 16384  ;;  %p2912_p6 = scmp.lt.s32.totalorder %s38_s29, %s38_s29 }
  0x11   :  { %p2908_p5 = scmp.ne.s32.totalorder %s38_s29, %s2907_s30  ;;  %p2913_p7 = scmp.lt.s32.totalorder %s2907_s30, %s2907_s30 }
  0x13   :  { %p2914_p8 = por %p2913_p7, %p2912_p6 }
  0x15   :  { %p2915_p9 = pnand %p2914_p8, %p2908_p5 }
  0x17   :  { %2918 = shalt.err (!%p2915_p9)
}
  0x18   :  { %s2949_s7 = smov 4  }
  0x19   :  { %43 = dma.hbm_to_vmem [thread:$0]  %s3143_s4, 16384, %s38_s29, [#allocation6], %s2947_s25, %s2947_s25, %s2949_s7  }
  0x1a   :  { %2939 = dma.done.wait [#allocation3], 4096  }
  0x1b   :  { %2940 = vsyncadd [#allocation3], 4294963200 }
  0x1c   :  { %2941 = dma.done.wait [#allocation6], 16384  }
  0x1d   :  { %2942 = vsyncadd [#allocation6], 4294950912  ;;  %v2950_v0 = vmov 0.0   ;;  %vm2951_vm0 = vmmov 0   ;;  %v2677_v1 = vld [vmem:[%s3140_s1 + $0x38] sm:$0xff]   ;;  %v54_v2 = vlaneseq  ;;  %v2678_v3 = vld [vmem:[%s3140_s1 + $0x30] sm:$0xff]  }
  0x1e   :  { %2647 = vmatprep.subr.bf16.mxu0 %v2950_v0  ;;  %2663 = vmatprep.mubr.msk.bf16.mxu0 %vm2951_vm0, %v2950_v0  ;;  %v2679_v5 = vld [vmem:[%s3140_s1 + $0x28] sm:$0xff]   ;;  %v2265_v6 = vld [vmem:[%s3139_s0] ss:$0 sm:$0xff]  ;;  %v2681_v9 = vld [vmem:[%s3140_s1 + $0x18] sm:$0xff]   ;;  %v2952_v22 = vmov 1.0|1.0  }
  0x1f   :  { %2648 = vmatpush3.bf16.msra.mxu0 %v2677_v1  ;;  %v3002_v4 = vshrl.u32 %v54_v2, 7  ;;  %v2680_v7 = vld [vmem:[%s3140_s1 + $0x20] sm:$0xff]   ;;  %v2682_v10 = vld [vmem:[%s3140_s1 + $0x10] sm:$0xff]   ;;  %v2683_v11 = vld [vmem:[%s3140_s1 + $0x8] sm:$0xff]   ;;  %v2953_v36 = vmov 0   ;;  %vm453_vm3 = vcmask 261120  }
  0x20   :  { %2649 = vmatprep.subr.bf16.mxu0 %v2950_v0  ;;  %v193_v13 = vld [vmem:[#allocation2 + $0x80] sm:$0xff]  ;;  %v194_v31 = vld [vmem:[#allocation2 + $0x88] sm:$0xff]  ;;  %v199_v33 = vld [vmem:[#allocation2 + $0xb0] sm:$0xff]  ;;  %489 = vmatprep.mubr.bf16.mxu1 %v2953_v36 }
  0x21   :  { %vm63_vm1 = vcmp.eq.s32.totalorder %v2265_v6, %v3002_v4  ;;  %v201_v14 = vld [vmem:[#allocation2 + $0xc0] sm:$0xff]  ;;  %v202_v32 = vld [vmem:[#allocation2 + $0xc8] sm:$0xff]  ;;  %v207_v35 = vld [vmem:[#allocation2 + $0xf0] sm:$0xff] }
  0x22   :  { %v2266_v8 = vsel %vm63_vm1, 1.0, %v2950_v0  ;;  %vm3023_vm2 = vmpackc.low %vm63_vm1, %vm63_vm1  ;;  %v197_v15 = vld [vmem:[#allocation2 + $0xa0] sm:$0xff]  ;;  %v2294_v17 = vcombine.high %v193_v13, %v201_v14  ;;  %v2293_v18 = vcombine.low %v193_v13, %v201_v14  ;;  %v2296_v34 = vcombine.high %v194_v31, %v202_v32  ;;  %v178_v43 = vld [vmem:[#allocation2 + $0x8] sm:$0xff] }
  0x23   :  { %2650 = vmatpush3.bf16.msra.mxu0 %v2678_v3  ;;  %66 = vadd.xlane.f32.xlu0 %v2266_v8  ;;  %v2684_v16 = vld [vmem:[%s3140_s1] sm:$0xff]   ;;  %v2295_v37 = vcombine.low %v194_v31, %v202_v32  ;;  %v2305_v38 = vcombine.low %v199_v33, %v207_v35  ;;  %v2306_v39 = vcombine.high %v199_v33, %v207_v35  ;;  %v186_v45 = vld [vmem:[#allocation2 + $0x48] sm:$0xff]  ;;  %v183_v46 = vld [vmem:[#allocation2 + $0x30] sm:$0xff] }
  0x24   :  { %2651 = vmatprep.subr.bf16.mxu0 %v2950_v0  ;;  %v205_v19 = vld [vmem:[#allocation2 + $0xe0] sm:$0xff]  ;;  %469 = vmatprep.subr.bf16.mxu1 %v2294_v17  ;;  %v191_v47 = vld [vmem:[#allocation2 + $0x70] sm:$0xff]  ;;  %v2280_v51 = vcombine.high %v178_v43, %v186_v45  ;;  %v2279_v57 = vcombine.low %v178_v43, %v186_v45  ;;  %v204_v1 = vld [vmem:[#allocation2 + $0xd8] sm:$0xff] }
  0x25   :  { %470 = vmatpush1.bf16.msra.mxu1 %v2293_v18  ;;  %v2302_v20 = vcombine.high %v197_v15, %v205_v19  ;;  %v2301_v21 = vcombine.low %v197_v15, %v205_v19  ;;  %v177_v23 = vld [vmem:[#allocation2] sm:$0xff]  ;;  %v2290_v52 = vcombine.high %v183_v46, %v191_v47  ;;  %v195_v54 = vld [vmem:[#allocation2 + $0x90] sm:$0xff]  ;;  %v2289_v58 = vcombine.low %v183_v46, %v191_v47  ;;  %v188_v6 = vld [vmem:[#allocation2 + $0x58] sm:$0xff] }
  0x26   :  { %v185_v24 = vld [vmem:[#allocation2 + $0x40] sm:$0xff]  ;;  %v203_v55 = vld [vmem:[#allocation2 + $0xd0] sm:$0xff]  ;;  %v182_v13 = vld [vmem:[#allocation2 + $0x28] sm:$0xff] }
  0x27   :  { %2652 = vmatpush3.bf16.msra.mxu0 %v2679_v5  ;;  %v181_v25 = vld [vmem:[#allocation2 + $0x20] sm:$0xff]  ;;  %v2278_v26 = vcombine.high %v177_v23, %v185_v24  ;;  %v2277_v28 = vcombine.low %v177_v23, %v185_v24  ;;  %v2298_v59 = vcombine.high %v195_v54, %v203_v55  ;;  %v179_v60 = vld [vmem:[#allocation2 + $0x10] sm:$0xff]  ;;  %v2297_v62 = vcombine.low %v195_v54, %v203_v55  ;;  %v180_v5 = vld [vmem:[#allocation2 + $0x18] sm:$0xff] }
  0x28   :  { %2653 = vmatprep.subr.bf16.mxu0 %v2950_v0  ;;  %v189_v27 = vld [vmem:[#allocation2 + $0x60] sm:$0xff]  ;;  %v187_v61 = vld [vmem:[#allocation2 + $0x50] sm:$0xff]  ;;  %v2284_v8 = vcombine.high %v180_v5, %v188_v6  ;;  %v190_v14 = vld [vmem:[#allocation2 + $0x68] sm:$0xff]  ;;  %v239_v54 = vsub.s32 6, %v3002_v4 }
  0x29   :  { %v2285_v29 = vcombine.low %v181_v25, %v189_v27  ;;  %v2286_v30 = vcombine.high %v181_v25, %v189_v27  ;;  %471 = vmatprep.subr.bf16.mxu1 %v2278_v26  ;;  %v2282_v63 = vcombine.high %v179_v60, %v187_v61  ;;  %v2281_v2 = vcombine.low %v179_v60, %v187_v61  ;;  %v200_v17 = vld [vmem:[#allocation2 + $0xb8] sm:$0xff]  ;;  %v2691_v32 = vld [vmem:[#allocation5 + $0x28] sm:$0xff]   ;;  %v2694_v35 = vld [vmem:[#allocation5 + $0xf0] sm:$0xff]  }
  0x2a   :  { %472 = vmatpush1.bf16.msra.mxu1 %v2277_v28  ;;  %v208_v18 = vld [vmem:[#allocation2 + $0xf8] sm:$0xff]  ;;  %v2287_v19 = vcombine.low %v182_v13, %v190_v14  ;;  %v2687_v28 = vld [vmem:[#allocation5 + $0x70] sm:$0xff]   ;;  %v2702_v43 = vld [vmem:[#allocation5 + $0xe0] sm:$0xff]  }
  0x2b   :  { %2654 = vmatpush3.bf16.msra.mxu0 %v2680_v7  ;;  %510 = vmatprep.subr.bf16.mxu1 %v2296_v34  ;;  %v2307_v23 = vcombine.low %v200_v17, %v208_v18  ;;  %v2685_v26 = vld [vmem:[#allocation5 + $0x78] sm:$0xff]   ;;  %v2693_v34 = vld [vmem:[#allocation5 + $0x60] sm:$0xff]   ;;  %v2705_v46 = vld [vmem:[#allocation5 + $0x48] sm:$0xff]  }
  0x2c   :  { %2655 = vmatprep.subr.bf16.mxu0 %v2950_v0  ;;  %v2686_v27 = vld [vmem:[#allocation5 + $0x38] sm:$0xff]   ;;  %v2704_v45 = vld [vmem:[#allocation5 + $0xa0] sm:$0xff]   ;;  %v2713_v55 = vld [vmem:[#allocation5 + $0xc8] sm:$0xff]  }
  0x2d   :  { %v2690_v31 = vld [vmem:[#allocation5 + $0xf8] sm:$0xff]   ;;  %v2717_v60 = vld [vmem:[#allocation5 + $0xc0] sm:$0xff]  }
  0x2e   :  { %v2692_v33 = vld [vmem:[#allocation5 + $0xb8] sm:$0xff]   ;;  %v2719_v61 = vld [vmem:[#allocation5 + $0x80] sm:$0xff]  }
  0x2f   :  { %2656 = vmatpush3.bf16.msra.mxu0 %v2681_v9  ;;  %v198_v9 = vld [vmem:[#allocation2 + $0xa8] sm:$0xff]  ;;  %v2706_v47 = vld [vmem:[#allocation5 + $0xd8] sm:$0xff]  }
  0x30   :  { %2657 = vmatprep.subr.bf16.mxu0 %v2950_v0 }
  0x33   :  { %2658 = vmatpush3.bf16.msra.mxu0 %v2682_v10  ;;  %v206_v10 = vld [vmem:[#allocation2 + $0xe8] sm:$0xff] }
  0x34   :  { %2659 = vmatprep.subr.bf16.mxu0 %v2950_v0  ;;  %v2304_v12 = vcombine.high %v198_v9, %v206_v10  ;;  %v2303_v15 = vcombine.low %v198_v9, %v206_v10  ;;  %v223_v10 = vsub.s32 2, %v3002_v4 }
  0x37   :  { %2660 = vmatpush3.bf16.msra.mxu0 %v2683_v11  ;;  %v2283_v11 = vcombine.low %v180_v5, %v188_v6 }
  0x38   :  { %2661 = vmatprep.subr.bf16.mxu0 %v2950_v0  ;;  %v196_v0 = vld [vmem:[#allocation2 + $0x98] sm:$0xff] }
  0x39   :  { %v2300_v3 = vcombine.high %v196_v0, %v204_v1  ;;  %v2299_v7 = vcombine.low %v196_v0, %v204_v1  ;;  %v3073_v0 = vld [vmem:[%s3142_s3] sm:$0xff]  ;;  %v219_v1 = vsub.s32 1, %v3002_v4 }
  0x3b   :  { %2662 = vmatpush3.bf16.msra.mxu0 %v2684_v16  ;;  %v2288_v16 = vcombine.high %v182_v13, %v190_v14  ;;  %v220_v5 = vrot.slane %v3073_v0, %v219_v1 }
  0x3c   :  { %633 = vmatprep.subr.bf16.mxu0 %v2302_v20  ;;  %v2308_v20 = vcombine.high %v200_v17, %v208_v18 }
  0x3e   :  { %2664 = vmatmul.mubr.msk.bf16.vlgmr.msra.gmra.mxu0 %vm3023_vm2, %v2952_v22  ;;  %v192_v22 = vld [vmem:[#allocation2 + $0x78] sm:$0xff] }
  0x3f   :  { %634 = vmatpush1.bf16.msra.mxu0 %v2301_v21  ;;  %653 = vmatprep.mubr.bf16.mxu0 %v2953_v36  ;;  %v184_v21 = vld [vmem:[#allocation2 + $0x38] sm:$0xff] }
  0x40   :  { %635 = vmatprep.subr.bf16.mxu0 %v2286_v30  ;;  %v2292_v24 = vcombine.high %v184_v21, %v192_v22  ;;  %v2291_v25 = vcombine.low %v184_v21, %v192_v22  ;;  %v2689_v30 = vld [vmem:[#allocation5 + $0x68] sm:$0xff]  }
  0x43   :  { %636 = vmatpush1.bf16.msra.mxu0 %v2285_v29  ;;  %v2688_v29 = vld [vmem:[#allocation5 + $0x30] sm:$0xff]  }
  0x44   :  { %715 = vmatprep.subr.bf16.mxu0 %v2306_v39  ;;  %v2698_v39 = vld [vmem:[#allocation5 + $0xe8] sm:$0xff]  }
  0xac   :  { %v67_v40 = vpop.xlane.xlu0 %66 }
  0xad   :  { %v173_v41 = vmax.f32 %v67_v40, 1.0  ;;  %v2699_v40 = vld [vmem:[#allocation5 + $0x18] sm:$0xff]  }
  0xaf   :  { %2813 = vrcp.f32 %v173_v41  ;;  %v2700_v41 = vld [vmem:[#allocation5 + $0xa8] sm:$0xff]  }
  0xbc   :  { %v2814_v42 = vpop.eup %2813 }
  0xfe   :  { %v167_v44 = vpop.f32.mrf.mxu0 }
  0xff   :  { %v175_v48 = vmul.f32 %v2814_v42, %v167_v44  ;;  %v2701_v42 = vld [vmem:[#allocation5 + $0x50] sm:$0xff]  }
 0x100   :  { %v2665_v49 = vpop.f32.mrf.mxu0  ;;  %v2703_v44 = vld [vmem:[#allocation5 + $0x10] sm:$0xff]  }
 0x101   :  { %v3034_v50 = vpack.c.bf16 %v175_v48, %v175_v48  ;;  %v2707_v48 = vld [vmem:[#allocation5 + $0x8] sm:$0xff]   ;;  %v2708_v49 = vld [vmem:[#allocation5 + $0x98] sm:$0xff]  }
 0x102   :  { %v170_v53 = vpop.f32.mrf.mxu0 }
 0x103   :  { %2309 = vmatmul.mubr.msk.bf16.vlgmr.msra.gmra.mxu1 %vm453_vm3, %v3034_v50  ;;  %2313 = vmatmul.mubr.msk.bf16.vlgmr.msra.gmra.mxu0 %vm453_vm3, %v3034_v50  ;;  %v2712_v53 = vld [vmem:[#allocation5 + $0x90] sm:$0xff]  }
 0x104   :  { %511 = vmatpush1.bf16.msra.mxu1 %v2295_v37  ;;  %v2666_v56 = vpop.f32.mrf.mxu0  ;;  %716 = vmatpush1.bf16.msra.mxu0 %v2305_v38  ;;  %v2696_v37 = vld [vmem:[#allocation5 + $0xb0] sm:$0xff]   ;;  %v2697_v38 = vld [vmem:[#allocation5 + $0x58] sm:$0xff]  }
 0x105   :  { %512 = vmatprep.subr.bf16.mxu1 %v2280_v51  ;;  %717 = vmatprep.subr.bf16.mxu0 %v2290_v52  ;;  %v2710_v51 = vld [vmem:[#allocation5 + $0xd0] sm:$0xff]   ;;  %v2711_v52 = vld [vmem:[#allocation5] sm:$0xff]   ;;  %v2714_v56 = vld [vmem:[#allocation5 + $0x178] sm:$0xff]  }
 0x106   :  { %530 = vmatprep.mubr.bf16.mxu1 %v2953_v36  ;;  %735 = vmatprep.mubr.bf16.mxu0 %v2953_v36 }
 0x108   :  { %513 = vmatpush1.bf16.msra.mxu1 %v2279_v57  ;;  %718 = vmatpush1.bf16.msra.mxu0 %v2289_v58  ;;  %v3062_v57 = vld [vmem:[%s3142_s3 + $0x8] sm:$0xff] }
 0x109   :  { %551 = vmatprep.subr.bf16.mxu1 %v2298_v59  ;;  %2471 = vmatprep.subr.bf16.mxu0 %v2685_v26  ;;  %v2715_v58 = vld [vmem:[#allocation5 + $0x88] sm:$0xff]   ;;  %v3067_v59 = vrot.slane %v3062_v57, %v239_v54 }
 0x10b   :  { %2310 = vmatmul.mubr.msk.bf16.vlgmr.msra.gmra.mxu1 %vm453_vm3, %v3034_v50  ;;  %2315 = vmatmul.mubr.msk.bf16.vlgmr.msra.gmra.mxu0 %vm453_vm3, %v3034_v50 }
 0x10c   :  { %552 = vmatpush1.bf16.msra.mxu1 %v2297_v62  ;;  %571 = vmatprep.mubr.bf16.mxu1 %v2953_v36  ;;  %v2722_v62 = vld [vmem:[#allocation5 + $0x1f8] sm:$0xff]  }
 0x10d   :  { %553 = vmatprep.subr.bf16.mxu1 %v2282_v63  ;;  %2472 = vmatpush3.bf16.msra.mxu0 %v2686_v27  ;;  %v215_v63 = vsub.s32 0, %v3002_v4 }
 0x10e   :  { %2473 = vmatprep.subr.bf16.mxu0 %v2687_v28 }
 0x110   :  { %554 = vmatpush1.bf16.msra.mxu1 %v2281_v2  ;;  %v216_v2 = vrot.slane %v3073_v0, %v215_v63 }
 0x111   :  { %592 = vmatprep.subr.bf16.mxu1 %v2300_v3  ;;  %2474 = vmatpush3.bf16.msra.mxu0 %v2688_v29  ;;  %v248_v3 = vrot.slane %v3062_v57, %v215_v63 }
 0x112   :  { %2475 = vmatprep.subr.bf16.mxu0 %v2689_v30 }
 0x113   :  { %2311 = vmatmul.mubr.msk.bf16.vlgmr.msra.gmra.mxu1 %vm453_vm3, %v3034_v50 }
 0x114   :  { %593 = vmatpush1.bf16.msra.mxu1 %v2299_v7  ;;  %612 = vmatprep.mubr.bf16.mxu1 %v2953_v36 }
 0x115   :  { %594 = vmatprep.subr.bf16.mxu1 %v2284_v8  ;;  %2476 = vmatpush3.bf16.msra.mxu0 %v2691_v32 }
 0x116   :  { %2477 = vmatprep.subr.bf16.mxu0 %v2693_v34 }
 0x118   :  { %595 = vmatpush1.bf16.msra.mxu1 %v2283_v11  ;;  %v231_v11 = vsub.s32 4, %v3002_v4 }
 0x119   :  { %674 = vmatprep.subr.bf16.mxu1 %v2304_v12 }
 0x11a   :  { %v264_v21 = vrot.slane %v3062_v57, %v231_v11 }
 0x11b   :  { %2312 = vmatmul.mubr.msk.bf16.vlgmr.msra.gmra.mxu1 %vm453_vm3, %v3034_v50 }
 0x11c   :  { %675 = vmatpush1.bf16.msra.mxu1 %v2303_v15  ;;  %694 = vmatprep.mubr.bf16.mxu1 %v2953_v36 }
 0x11d   :  { %676 = vmatprep.subr.bf16.mxu1 %v2288_v16  ;;  %v227_v16 = vsub.s32 3, %v3002_v4 }
 0x120   :  { %677 = vmatpush1.bf16.msra.mxu1 %v2287_v19 }
 0x121   :  { %756 = vmatprep.subr.bf16.mxu1 %v2308_v20  ;;  %v224_v20 = vrot.slane %v3073_v0, %v223_v10 }
 0x123   :  { %2314 = vmatmul.mubr.msk.bf16.vlgmr.msra.gmra.mxu1 %vm453_vm3, %v3034_v50 }
 0x124   :  { %757 = vmatpush1.bf16.msra.mxu1 %v2307_v23  ;;  %776 = vmatprep.mubr.bf16.mxu1 %v2953_v36  ;;  %v2695_v36 = vld [vmem:[#allocation5 + $0x20] sm:$0xff]  }
 0x125   :  { %758 = vmatprep.subr.bf16.mxu1 %v2292_v24  ;;  %2478 = vmatpush3.bf16.msra.mxu0 %v2695_v36  ;;  %v228_v24 = vrot.slane %v3073_v0, %v227_v16  ;;  %v235_v36 = vsub.s32 5, %v3002_v4 }
 0x126   :  { %2479 = vmatprep.subr.bf16.mxu0 %v2697_v38 }
 0x128   :  { %759 = vmatpush1.bf16.msra.mxu1 %v2291_v25 }
 0x129   :  { %2493 = vmatprep.subr.bf16.mxu1 %v2690_v31  ;;  %2480 = vmatpush3.bf16.msra.mxu0 %v2699_v40 }
 0x12a   :  { %2481 = vmatprep.subr.bf16.mxu0 %v2701_v42 }
 0x12b   :  { %2316 = vmatmul.mubr.msk.bf16.vlgmr.msra.gmra.mxu1 %vm453_vm3, %v3034_v50  ;;  %v2709_v50 = vld [vmem:[#allocation5 + $0x40] sm:$0xff]  }
 0x12c   :  { %2494 = vmatpush3.bf16.msra.mxu1 %v2692_v33 }
 0x12d   :  { %2495 = vmatprep.subr.bf16.mxu1 %v2694_v35  ;;  %2482 = vmatpush3.bf16.msra.mxu0 %v2703_v44 }
 0x12e   :  { %2483 = vmatprep.subr.bf16.mxu0 %v2705_v46 }
 0x130   :  { %2496 = vmatpush3.bf16.msra.mxu1 %v2696_v37 }
 0x131   :  { %2497 = vmatprep.subr.bf16.mxu1 %v2698_v39  ;;  %2484 = vmatpush3.bf16.msra.mxu0 %v2707_v48  ;;  %v236_v39 = vrot.slane %v3073_v0, %v235_v36 }
 0x132   :  { %2485 = vmatprep.subr.bf16.mxu0 %v2709_v50 }
 0x134   :  { %2498 = vmatpush3.bf16.msra.mxu1 %v2700_v41 }
 0x135   :  { %2499 = vmatprep.subr.bf16.mxu1 %v2702_v43  ;;  %2486 = vmatpush3.bf16.msra.mxu0 %v2711_v52 }
 0x136   :  { %2515 = vmatprep.subr.bf16.mxu0 %v2714_v56 }
 0x138   :  { %2500 = vmatpush3.bf16.msra.mxu1 %v2704_v45  ;;  %v243_v45 = vsub.s32 7, %v3002_v4 }
 0x139   :  { %2501 = vmatprep.subr.bf16.mxu1 %v2706_v47 }
 0x13a   :  { %v244_v52 = vrot.slane %v3073_v0, %v243_v45 }
 0x13c   :  { %2502 = vmatpush3.bf16.msra.mxu1 %v2708_v49  ;;  %v232_v49 = vrot.slane %v3073_v0, %v231_v11 }
 0x13d   :  { %2503 = vmatprep.subr.bf16.mxu1 %v2710_v51 }
 0x140   :  { %2504 = vmatpush3.bf16.msra.mxu1 %v2712_v53  ;;  %v252_v53 = vrot.slane %v3062_v57, %v219_v1 }
 0x141   :  { %2505 = vmatprep.subr.bf16.mxu1 %v2713_v55 }
 0x144   :  { %2506 = vmatpush3.bf16.msra.mxu1 %v2715_v58 }
 0x145   :  { %2507 = vmatprep.subr.bf16.mxu1 %v2717_v60 }
 0x148   :  { %2508 = vmatpush3.bf16.msra.mxu1 %v2719_v61 }
 0x149   :  { %2537 = vmatprep.subr.bf16.mxu1 %v2722_v62 }
 0x1c3   :  { %v491_v6 = vpop.f32.mrf.mxu1  ;;  %v655_v7 = vpop.f32.mrf.mxu0 }
 0x1c4   :  { %v492_v8 = vadd.f32 %v491_v6, %v216_v2  ;;  %v3079_v9 = vadd.f32 %v655_v7, %v248_v3  ;;  %v240_v7 = vrot.slane %v3073_v0, %v239_v54 }
 0x1c5   :  { %v493_v12 = vpop.f32.mrf.mxu1  ;;  %v657_v13 = vpop.f32.mrf.mxu0 }
 0x1c6   :  { %v2317_v14 = vmul.f32 -1.442695, %v492_v8  ;;  %v494_v15 = vadd.f32 %v493_v12, %v220_v5  ;;  %v658_v2 = vadd.f32 %v657_v13, %v252_v53  ;;  %v2730_v53 = vld [vmem:[#allocation5 + $0x1e8] sm:$0xff]  }
 0x1c7   :  { %v495_v17 = vpop.f32.mrf.mxu1  ;;  %v659_v18 = vpop.f32.mrf.mxu0 }
 0x1c8   :  { %2815 = vpow2.f32 %v2317_v14  ;;  %v2318_v19 = vmul.f32 -1.442695, %v494_v15  ;;  %v2326_v1 = vmul.f32 -1.442695, %v658_v2  ;;  %v260_v14 = vrot.slane %v3062_v57, %v227_v16 }
 0x1c9   :  { %v496_v22 = vpop.f32.mrf.mxu1  ;;  %v660_v23 = vpop.f32.mrf.mxu0  ;;  %v268_v2 = vrot.slane %v3062_v57, %v235_v36  ;;  %v2325_v36 = vmul.f32 -1.442695, %v3079_v9  ;;  %v2743_v9 = vld [vmem:[#allocation5 + $0x100] sm:$0xff]  }
 0x1ca   :  { %2817 = vpow2.f32 %v2318_v19 }
 0x1cb   :  { %v532_v25 = vpop.f32.mrf.mxu1  ;;  %v737_v26 = vpop.f32.mrf.mxu0 }
 0x1cc   :  { %v533_v27 = vadd.f32 %v532_v25, %v224_v20  ;;  %v3091_v28 = vadd.f32 %v737_v26, %v264_v21  ;;  %v2716_v21 = vld [vmem:[#allocation5 + $0x138] sm:$0xff]  }
 0x1cd   :  { %v534_v29 = vpop.f32.mrf.mxu1  ;;  %v3093_v30 = vpop.f32.mrf.mxu0 }
 0x1ce   :  { %v2319_v31 = vmul.f32 -1.442695, %v533_v27  ;;  %v535_v32 = vadd.f32 %v534_v29, %v228_v24  ;;  %v2718_v24 = vld [vmem:[#allocation5 + $0x170] sm:$0xff]  }
 0x1cf   :  { %v536_v33 = vpop.f32.mrf.mxu1  ;;  %v741_v34 = vpop.f32.mrf.mxu0 }
 0x1d0   :  { %2819 = vpow2.f32 %v2319_v31  ;;  %v2320_v35 = vmul.f32 -1.442695, %v535_v32  ;;  %v2720_v31 = vld [vmem:[#allocation5 + $0x130] sm:$0xff]   ;;  %v2721_v33 = vld [vmem:[#allocation5 + $0x168] sm:$0xff]  }
 0x1d1   :  { %v537_v37 = vpop.f32.mrf.mxu1  ;;  %v742_v38 = vpop.f32.mrf.mxu0 }
 0x1d2   :  { %2821 = vpow2.f32 %v2320_v35 }
 0x1d3   :  { %v573_v40 = vpop.f32.mrf.mxu1 }
 0x1d4   :  { %v574_v56 = vadd.f32 %v573_v40, %v232_v49  ;;  %v2724_v40 = vld [vmem:[#allocation5 + $0x1b8] sm:$0xff]   ;;  %v2727_v49 = vld [vmem:[#allocation5 + $0x120] sm:$0xff]  }
 0x1d5   :  { %v2816_v41 = vpop.eup %2815  ;;  %v575_v42 = vpop.f32.mrf.mxu1 }
 0x1d6   :  { %v833_v43 = vadd.f32 1.0, %v2816_v41  ;;  %v576_v44 = vadd.f32 %v575_v42, %v236_v39  ;;  %v2321_v6 = vmul.f32 -1.442695, %v574_v56  ;;  %v2723_v39 = vld [vmem:[#allocation5 + $0x128] sm:$0xff]   ;;  %v2731_v56 = vld [vmem:[#allocation5 + $0x118] sm:$0xff]  }
 0x1d7   :  { %v2818_v46 = vpop.eup %2817  ;;  %v577_v47 = vpop.f32.mrf.mxu1 }
 0x1d8   :  { %v834_v48 = vadd.f32 1.0, %v2818_v46  ;;  %2823 = vrcp.f32 %v833_v43  ;;  %v2322_v50 = vmul.f32 -1.442695, %v576_v44  ;;  %v2725_v43 = vld [vmem:[#allocation5 + $0x160] sm:$0xff]   ;;  %v2726_v44 = vld [vmem:[#allocation5 + $0x1f0] sm:$0xff]  }
 0x1d9   :  { %v578_v51 = vpop.f32.mrf.mxu1 }
 0x1da   :  { %2825 = vrcp.f32 %v834_v48 }
 0x1db   :  { %v614_v55 = vpop.f32.mrf.mxu1  ;;  %2827 = vpow2.f32 %v2322_v50  ;;  %v2728_v50 = vld [vmem:[#allocation5 + $0x1b0] sm:$0xff]  }
 0x1dc   :  { %v615_v13 = vadd.f32 %v614_v55, %v240_v7  ;;  %v2736_v7 = vld [vmem:[#allocation5 + $0x1a0] sm:$0xff]  }
 0x1dd   :  { %v2820_v58 = vpop.eup %2819  ;;  %v616_v60 = vpop.f32.mrf.mxu1 }
 0x1de   :  { %v835_v61 = vadd.f32 1.0, %v2820_v58  ;;  %v617_v62 = vadd.f32 %v616_v60, %v244_v52  ;;  %v2323_v0 = vmul.f32 -1.442695, %v615_v13  ;;  %v2729_v52 = vld [vmem:[#allocation5 + $0x158] sm:$0xff]   ;;  %v2732_v58 = vld [vmem:[#allocation5 + $0x1a8] sm:$0xff]  }
 0x1df   :  { %v2822_v63 = vpop.eup %2821  ;;  %v618_v3 = vpop.f32.mrf.mxu1 }
 0x1e0   :  { %v836_v5 = vadd.f32 1.0, %v2822_v63  ;;  %2829 = vrcp.f32 %v835_v61  ;;  %v2324_v8 = vmul.f32 -1.442695, %v617_v62  ;;  %v2733_v61 = vld [vmem:[#allocation5 + $0x150] sm:$0xff]   ;;  %v2734_v63 = vld [vmem:[#allocation5 + $0x1e0] sm:$0xff]  }
 0x1e1   :  { %v619_v11 = vpop.f32.mrf.mxu1 }
 0x1e2   :  { %2831 = vrcp.f32 %v836_v5  ;;  %v2737_v11 = vld [vmem:[#allocation5 + $0x148] sm:$0xff]  }
 0x1e3   :  { %v3108_v12 = vpop.f32.mrf.mxu1  ;;  %2833 = vpow2.f32 %v2321_v6  ;;  %v2735_v6 = vld [vmem:[#allocation5 + $0x110] sm:$0xff]  }
 0x1e4   :  { %2835 = vpow2.f32 %v2324_v8 }
 0x1e5   :  { %v698_v15 = vpop.f32.mrf.mxu1  ;;  %v2824_v17 = vpop.eup %2823  ;;  %2837 = vpow2.f32 %v2326_v1  ;;  %v2738_v1 = vld [vmem:[#allocation5 + $0x1d8] sm:$0xff]  }
 0x1e6   :  { %v699_v19 = vadd.f32 %v698_v15, %v260_v14  ;;  %v881_v23 = vpack.c.bf16 %v2824_v17, %v2824_v17  ;;  %2839 = vpow2.f32 %v2323_v0  ;;  %v740_v14 = vadd.f32 %v3093_v30, %v268_v2  ;;  %v2739_v15 = vld [vmem:[#allocation5 + $0x108] sm:$0xff]   ;;  %v2740_v17 = vld [vmem:[#allocation5 + $0x198] sm:$0xff]   ;;  %v2742_v0 = vld [vmem:[#allocation5 + $0x1d0] sm:$0xff]  }
 0x1e7   :  { %v2826_v18 = vpop.eup %2825  ;;  %v700_v54 = vpop.f32.mrf.mxu1  ;;  %v276_v30 = vrot.slane %v3062_v57, %v243_v45  ;;  %v2748_v45 = vld [vmem:[#allocation5 + $0x238] sm:$0xff]   ;;  %v2767_v2 = vld [vmem:[#allocation5 + $0x210] sm:$0xff]  }
 0x1e8   :  { %v882_v20 = vpack.c.bf16 %v2826_v18, %v2826_v18  ;;  %v2828_v25 = vpop.eup %2827  ;;  %v2328_v27 = vmul.f32 -1.442695, %v699_v19  ;;  %v256_v18 = vrot.slane %v3062_v57, %v223_v10  ;;  %v2741_v19 = vld [vmem:[#allocation5 + $0x140] sm:$0xff]   ;;  %v2745_v10 = vld [vmem:[#allocation5 + $0x1c8] sm:$0xff]  }
 0x1e9   :  { %v701_v22 = vpop.f32.mrf.mxu1  ;;  %v838_v26 = vadd.f32 1.0, %v2828_v25  ;;  %v2747_v57 = vld [vmem:[#allocation5 + $0x188] sm:$0xff]  }
 0x1ea   :  { %1960 = vmatprep.mubr.bf16.mxu0 %v882_v20  ;;  %v2330_v20 = vmul.f32 -1.442695, %v740_v14  ;;  %v2744_v22 = vld [vmem:[#allocation5 + $0x190] sm:$0xff]   ;;  %v2329_v14 = vmul.f32 -1.442695, %v3091_v28  ;;  %v2779_v28 = vld [vmem:[#allocation5 + $0x288] sm:$0xff]  }
 0x1eb   :  { %v778_v16 = vpop.f32.mrf.mxu1  ;;  %1961 = vmatmul.mubr.bf16.vlgmr.msra.gmra.mxu0 %v881_v23  ;;  %2841 = vrcp.f32 %v838_v26  ;;  %v697_v23 = vadd.f32 %v3108_v12, %v256_v18  ;;  %v2750_v12 = vld [vmem:[#allocation5 + $0x270] sm:$0xff]   ;;  %v2777_v18 = vld [vmem:[#allocation5 + $0x2c8] sm:$0xff]  }
 0x1ec   :  { %v3114_v29 = vadd.f32 %v778_v16, %v3067_v59  ;;  %2516 = vmatpush3.bf16.msra.mxu0 %v2716_v21  ;;  %2843 = vpow2.f32 %v2328_v27 }
 0x1ed   :  { %v3116_v32 = vpop.f32.mrf.mxu1  ;;  %2517 = vmatprep.subr.bf16.mxu0 %v2718_v24  ;;  %v2830_v34 = vpop.eup %2829  ;;  %v2746_v24 = vld [vmem:[#allocation5 + $0x278] sm:$0xff]   ;;  %v2327_v27 = vmul.f32 -1.442695, %v697_v23 }
 0x1ee   :  { %v883_v59 = vpack.c.bf16 %v2830_v34, %v2830_v34  ;;  %v781_v26 = vadd.f32 %v3116_v32, %v276_v30  ;;  %v2753_v32 = vld [vmem:[#allocation5 + $0x268] sm:$0xff]   ;;  %v2331_v30 = vmul.f32 -1.442695, %v3114_v29 }
 0x1ef   :  { %v2832_v35 = vpop.eup %2831  ;;  %v782_v37 = vpop.f32.mrf.mxu1  ;;  %v2787_v29 = vld [vmem:[#allocation5 + $0x328] sm:$0xff]  }
 0x1f0   :  { %2518 = vmatpush3.bf16.msra.mxu0 %v2720_v31  ;;  %v884_v38 = vpack.c.bf16 %v2832_v35, %v2832_v35  ;;  %v2834_v41 = vpop.eup %2833  ;;  %v2749_v31 = vld [vmem:[#allocation5 + $0x1c0] sm:$0xff]   ;;  %v2752_v37 = vld [vmem:[#allocation5 + $0x230] sm:$0xff]  }
 0x1f1   :  { %v783_v42 = vpop.f32.mrf.mxu1  ;;  %2519 = vmatprep.subr.bf16.mxu0 %v2721_v33  ;;  %v2836_v46 = vpop.eup %2835  ;;  %v837_v51 = vadd.f32 1.0, %v2834_v41  ;;  %v2332_v33 = vmul.f32 -1.442695, %v781_v26  ;;  %v2751_v35 = vld [vmem:[#allocation5 + $0x180] sm:$0xff]   ;;  %v2755_v41 = vld [vmem:[#allocation5 + $0x228] sm:$0xff]   ;;  %v2786_v26 = vld [vmem:[#allocation5 + $0x3f8] sm:$0xff]  }
 0x1f2   :  { %2000 = vmatprep.mubr.bf16.mxu1 %v884_v38  ;;  %v840_v47 = vadd.f32 1.0, %v2836_v46  ;;  %v2838_v48 = vpop.eup %2837  ;;  %v2754_v38 = vld [vmem:[#allocation5 + $0x2f8] sm:$0xff]   ;;  %v2758_v46 = vld [vmem:[#allocation5 + $0x2f0] sm:$0xff]  }
 0x1f3   :  { %2001 = vmatmul.mubr.bf16.vlgmr.msra.gmra.mxu1 %v883_v59  ;;  %v842_v55 = vadd.f32 1.0, %v2838_v48  ;;  %v2840_v60 = vpop.eup %2839  ;;  %v2756_v42 = vld [vmem:[#allocation5 + $0x2b8] sm:$0xff]  }
 0x1f4   :  { %2520 = vmatpush3.bf16.msra.mxu0 %v2723_v39  ;;  %2538 = vmatpush3.bf16.msra.mxu1 %v2724_v40  ;;  %2845 = vrcp.f32 %v840_v47  ;;  %v839_v8 = vadd.f32 1.0, %v2840_v60  ;;  %v2765_v60 = vld [vmem:[#allocation5 + $0x250] sm:$0xff]  }
 0x1f5   :  { %2521 = vmatprep.subr.bf16.mxu0 %v2725_v43  ;;  %2539 = vmatprep.subr.bf16.mxu1 %v2726_v44  ;;  %2847 = vrcp.f32 %v837_v51  ;;  %v2757_v43 = vld [vmem:[#allocation5 + $0x260] sm:$0xff]  }
 0x1f6   :  { %2849 = vrcp.f32 %v842_v55 }
 0x1f7   :  { %2851 = vrcp.f32 %v839_v8 }
 0x1f8   :  { %2522 = vmatpush3.bf16.msra.mxu0 %v2727_v49  ;;  %2540 = vmatpush3.bf16.msra.mxu1 %v2728_v50  ;;  %v2842_v62 = vpop.eup %2841  ;;  %v2759_v49 = vld [vmem:[#allocation5 + $0x220] sm:$0xff]   ;;  %v2760_v50 = vld [vmem:[#allocation5 + $0x2b0] sm:$0xff]  }
 0x1f9   :  { %2523 = vmatprep.subr.bf16.mxu0 %v2729_v52  ;;  %2541 = vmatprep.subr.bf16.mxu1 %v2730_v53  ;;  %v886_v3 = vpack.c.bf16 %v2842_v62, %v2842_v62  ;;  %v2844_v5 = vpop.eup %2843  ;;  %v2761_v52 = vld [vmem:[#allocation5 + $0x258] sm:$0xff]   ;;  %v2762_v53 = vld [vmem:[#allocation5 + $0x2e8] sm:$0xff]  }
 0x1fa   :  { %v844_v13 = vadd.f32 1.0, %v2844_v5 }
 0x1fb   :  { %2040 = vmatprep.mubr.bf16.mxu0 %v886_v3  ;;  %v2768_v3 = vld [vmem:[#allocation5 + $0x2a0] sm:$0xff]  }
 0x1fc   :  { %2524 = vmatpush3.bf16.msra.mxu0 %v2731_v56  ;;  %2542 = vmatpush3.bf16.msra.mxu1 %v2732_v58  ;;  %2853 = vrcp.f32 %v844_v13  ;;  %v2763_v56 = vld [vmem:[#allocation5 + $0x218] sm:$0xff]   ;;  %v2764_v58 = vld [vmem:[#allocation5 + $0x2a8] sm:$0xff]   ;;  %v2773_v13 = vld [vmem:[#allocation5 + $0x240] sm:$0xff]  }
 0x1fd   :  { %2525 = vmatprep.subr.bf16.mxu0 %v2733_v61  ;;  %2543 = vmatprep.subr.bf16.mxu1 %v2734_v63  ;;  %2855 = vpow2.f32 %v2325_v36  ;;  %v2766_v61 = vld [vmem:[#allocation5 + $0x2e0] sm:$0xff]   ;;  %v2776_v36 = vld [vmem:[#allocation5 + $0x290] sm:$0xff]  }
 0x1fe   :  { %2857 = vpow2.f32 %v2330_v20  ;;  %v2780_v20 = vld [vmem:[#allocation5 + $0x338] sm:$0xff]  }
 0x1ff   :  { %2859 = vpow2.f32 %v2327_v27 }
 0x200   :  { %2526 = vmatpush3.bf16.msra.mxu0 %v2735_v6  ;;  %2544 = vmatpush3.bf16.msra.mxu1 %v2736_v7  ;;  %2861 = vpow2.f32 %v2332_v33  ;;  %v2769_v6 = vld [vmem:[#allocation5 + $0x248] sm:$0xff]   ;;  %v2770_v7 = vld [vmem:[#allocation5 + $0x2d8] sm:$0xff]  }
 0x201   :  { %2527 = vmatprep.subr.bf16.mxu0 %v2737_v11  ;;  %2545 = vmatprep.subr.bf16.mxu1 %v2738_v1  ;;  %v2846_v54 = vpop.eup %2845  ;;  %v2771_v11 = vld [vmem:[#allocation5 + $0x208] sm:$0xff]   ;;  %v2772_v1 = vld [vmem:[#allocation5 + $0x298] sm:$0xff]  }
 0x202   :  { %v888_v21 = vpack.c.bf16 %v2846_v54, %v2846_v54  ;;  %v2848_v25 = vpop.eup %2847 }
 0x203   :  { %v2850_v4 = vpop.eup %2849  ;;  %v885_v16 = vpack.c.bf16 %v2848_v25, %v2848_v25  ;;  %v2785_v25 = vld [vmem:[#allocation5 + $0x368] sm:$0xff]  }
 0x204   :  { %2528 = vmatpush3.bf16.msra.mxu0 %v2739_v15  ;;  %2546 = vmatpush3.bf16.msra.mxu1 %v2740_v17  ;;  %v890_v34 = vpack.c.bf16 %v2850_v4, %v2850_v4  ;;  %v2852_v39 = vpop.eup %2851  ;;  %v2774_v15 = vld [vmem:[#allocation5 + $0x2d0] sm:$0xff]   ;;  %v2775_v17 = vld [vmem:[#allocation5 + $0x200] sm:$0xff]  }
 0x205   :  { %2080 = vmatprep.mubr.bf16.mxu1 %v888_v21  ;;  %2529 = vmatprep.subr.bf16.mxu0 %v2741_v19  ;;  %v887_v59 = vpack.c.bf16 %v2852_v39, %v2852_v39  ;;  %v2778_v19 = vld [vmem:[#allocation5 + $0x378] sm:$0xff]  }
 0x206   :  { %2547 = vmatprep.subr.bf16.mxu1 %v2742_v0  ;;  %v2795_v39 = vld [vmem:[#allocation5 + $0x318] sm:$0xff]  }
 0x208   :  { %2530 = vmatpush3.bf16.msra.mxu0 %v2743_v9  ;;  %2548 = vmatpush3.bf16.msra.mxu1 %v2744_v22  ;;  %v2781_v9 = vld [vmem:[#allocation5 + $0x2c0] sm:$0xff]   ;;  %v2782_v22 = vld [vmem:[#allocation5 + $0x370] sm:$0xff]  }
 0x209   :  { %2549 = vmatprep.subr.bf16.mxu1 %v2745_v10  ;;  %2559 = vmatprep.subr.bf16.mxu0 %v2746_v24  ;;  %v2854_v40 = vpop.eup %2853  ;;  %v2783_v10 = vld [vmem:[#allocation5 + $0x280] sm:$0xff]   ;;  %v2784_v24 = vld [vmem:[#allocation5 + $0x330] sm:$0xff]  }
 0x20a   :  { %v2856_v44 = vpop.eup %2855  ;;  %v892_v47 = vpack.c.bf16 %v2854_v40, %v2854_v40  ;;  %v2796_v40 = vld [vmem:[#allocation5 + $0x3a8] sm:$0xff]  }
 0x20b   :  { %2041 = vmatmul.mubr.bf16.vlgmr.msra.gmra.mxu0 %v885_v16  ;;  %v2858_v48 = vpop.eup %2857  ;;  %v841_v51 = vadd.f32 1.0, %v2856_v44  ;;  %v2789_v16 = vld [vmem:[#allocation5 + $0x360] sm:$0xff]  }
 0x20c   :  { %2550 = vmatpush3.bf16.msra.mxu1 %v2747_v57  ;;  %2560 = vmatpush3.bf16.msra.mxu0 %v2748_v45  ;;  %v846_v55 = vadd.f32 1.0, %v2858_v48  ;;  %v2860_v62 = vpop.eup %2859  ;;  %v2788_v45 = vld [vmem:[#allocation5 + $0x3b8] sm:$0xff]   ;;  %v2800_v44 = vld [vmem:[#allocation5 + $0x3a0] sm:$0xff]  }
 0x20d   :  { %2120 = vmatprep.mubr.bf16.mxu0 %v890_v34  ;;  %2551 = vmatprep.subr.bf16.mxu1 %v2749_v31  ;;  %2863 = vrcp.f32 %v841_v51  ;;  %v2862_v63 = vpop.eup %2861  ;;  %v843_v5 = vadd.f32 1.0, %v2860_v62  ;;  %v2791_v34 = vld [vmem:[#allocation5 + $0x320] sm:$0xff]   ;;  %v2802_v48 = vld [vmem:[#allocation5 + $0x3d8] sm:$0xff]  }
 0x20e   :  { %2561 = vmatprep.subr.bf16.mxu0 %v2750_v12  ;;  %2865 = vrcp.f32 %v846_v55  ;;  %v848_v8 = vadd.f32 1.0, %v2862_v63  ;;  %v2790_v12 = vld [vmem:[#allocation5 + $0x3f0] sm:$0xff]   ;;  %v2805_v51 = vld [vmem:[#allocation5 + $0x340] sm:$0xff]  }
 0x20f   :  { %2867 = vrcp.f32 %v843_v5  ;;  %v2808_v55 = vld [vmem:[#allocation5 + $0x390] sm:$0xff]   ;;  %v2811_v62 = vld [vmem:[#allocation5 + $0x3c0] sm:$0xff]  }
 0x210   :  { %2552 = vmatpush3.bf16.msra.mxu1 %v2751_v35  ;;  %2562 = vmatpush3.bf16.msra.mxu0 %v2752_v37  ;;  %2869 = vrcp.f32 %v848_v8  ;;  %v2792_v35 = vld [vmem:[#allocation5 + $0x3b0] sm:$0xff]   ;;  %v2812_v63 = vld [vmem:[#allocation5 + $0x380] sm:$0xff]  }
 0x211   :  { %2563 = vmatprep.subr.bf16.mxu0 %v2753_v32  ;;  %2581 = vmatprep.subr.bf16.mxu1 %v2754_v38  ;;  %2871 = vpow2.f32 %v2329_v14  ;;  %v2793_v32 = vld [vmem:[#allocation5 + $0x358] sm:$0xff]   ;;  %v2794_v38 = vld [vmem:[#allocation5 + $0x3e8] sm:$0xff]  }
 0x212   :  { %2873 = vpow2.f32 %v2331_v30 }
 0x213   :  { %2081 = vmatmul.mubr.bf16.vlgmr.msra.gmra.mxu1 %v887_v59 }
 0x214   :  { %2564 = vmatpush3.bf16.msra.mxu0 %v2755_v41  ;;  %2582 = vmatpush3.bf16.msra.mxu1 %v2756_v42  ;;  %v2797_v41 = vld [vmem:[#allocation5 + $0x350] sm:$0xff]   ;;  %v2798_v42 = vld [vmem:[#allocation5 + $0x3e0] sm:$0xff]  }
 0x215   :  { %2160 = vmatprep.mubr.bf16.mxu1 %v892_v47  ;;  %2565 = vmatprep.subr.bf16.mxu0 %v2757_v43  ;;  %v2799_v43 = vld [vmem:[#allocation5 + $0x310] sm:$0xff]   ;;  %v2801_v47 = vld [vmem:[#allocation5 + $0x348] sm:$0xff]  }
 0x216   :  { %2583 = vmatprep.subr.bf16.mxu1 %v2758_v46 }
 0x218   :  { %2566 = vmatpush3.bf16.msra.mxu0 %v2759_v49  ;;  %2584 = vmatpush3.bf16.msra.mxu1 %v2760_v50  ;;  %v2803_v49 = vld [vmem:[#allocation5 + $0x308] sm:$0xff]   ;;  %v2804_v50 = vld [vmem:[#allocation5 + $0x398] sm:$0xff]  }
 0x219   :  { %2567 = vmatprep.subr.bf16.mxu0 %v2761_v52  ;;  %2585 = vmatprep.subr.bf16.mxu1 %v2762_v53  ;;  %v2806_v52 = vld [vmem:[#allocation5 + $0x3d0] sm:$0xff]   ;;  %v2807_v53 = vld [vmem:[#allocation5 + $0x300] sm:$0xff]  }
 0x21a   :  { %v2864_v54 = vpop.eup %2863 }
 0x21b   :  { %v2866_v0 = vpop.eup %2865  ;;  %v889_v21 = vpack.c.bf16 %v2864_v54, %v2864_v54 }
 0x21c   :  { %2568 = vmatpush3.bf16.msra.mxu0 %v2763_v56  ;;  %2586 = vmatpush3.bf16.msra.mxu1 %v2764_v58  ;;  %v894_v23 = vpack.c.bf16 %v2866_v0, %v2866_v0  ;;  %v2868_v4 = vpop.eup %2867  ;;  %v2809_v56 = vld [vmem:[#allocation5 + $0x3c8] sm:$0xff]  }
 0x21d   :  { %2569 = vmatprep.subr.bf16.mxu0 %v2765_v60  ;;  %2587 = vmatprep.subr.bf16.mxu1 %v2766_v61  ;;  %v2870_v57 = vpop.eup %2869  ;;  %v891_v27 = vpack.c.bf16 %v2868_v4, %v2868_v4  ;;  %v2810_v60 = vld [vmem:[#allocation5 + $0x388] sm:$0xff]  }
 0x21e   :  { %v2872_v31 = vpop.eup %2871  ;;  %v896_v33 = vpack.c.bf16 %v2870_v57, %v2870_v57 }
 0x21f   :  { %v845_v37 = vadd.f32 1.0, %v2872_v31  ;;  %v2874_v59 = vpop.eup %2873 }
 0x220   :  { %2570 = vmatpush3.bf16.msra.mxu0 %v2767_v2  ;;  %2588 = vmatpush3.bf16.msra.mxu1 %v2768_v3  ;;  %v847_v46 = vadd.f32 1.0, %v2874_v59 }
 0x221   :  { %2571 = vmatprep.subr.bf16.mxu0 %v2769_v6  ;;  %2589 = vmatprep.subr.bf16.mxu1 %v2770_v7  ;;  %2875 = vrcp.f32 %v845_v37 }
 0x222   :  { %2877 = vrcp.f32 %v847_v46 }
 0x224   :  { %2572 = vmatpush3.bf16.msra.mxu0 %v2771_v11  ;;  %2590 = vmatpush3.bf16.msra.mxu1 %v2772_v1  ;;  %v2333_v1 = vld [vmem:[%s3144_s5] ss:$0 sm:$0xff]  ;;  %s2954_s5 = smov [#allocation7]  }
 0x225   :  { %2573 = vmatprep.subr.bf16.mxu0 %v2773_v13  ;;  %2591 = vmatprep.subr.bf16.mxu1 %v2774_v15  ;;  %s2255_s29 = sshll.u32 %s2954_s5, 4  ;;  %s2256_s29 = int_to_ptr.vmem [resolvable:$true] %s2255_s29 }
 0x226   :  { %s2919_s30 = scalar_lea.vmem %s2256_s29, 128  ;;  %p2924_p11 = scmp.lt.s32.totalorder %s2256_s29, %s2256_s29 }
 0x227   :  { %p2920_p10 = scmp.ne.s32.totalorder %s2256_s29, %s2919_s30  ;;  %p2925_p12 = scmp.lt.s32.totalorder %s2919_s30, %s2919_s30 }
 0x228   :  { %2574 = vmatpush3.bf16.msra.mxu0 %v2775_v17  ;;  %2592 = vmatpush3.bf16.msra.mxu1 %v2776_v36 }
 0x229   :  { %2593 = vmatprep.subr.bf16.mxu1 %v2777_v18  ;;  %2603 = vmatprep.subr.bf16.mxu0 %v2778_v19  ;;  %p2926_p13 = por %p2925_p12, %p2924_p11 }
 0x22b   :  { %2121 = vmatmul.mubr.bf16.vlgmr.msra.gmra.mxu0 %v889_v21  ;;  %p2927_p0 = pnand %p2926_p13, %p2920_p10 }
 0x22c   :  { %2594 = vmatpush3.bf16.msra.mxu1 %v2779_v28  ;;  %2604 = vmatpush3.bf16.msra.mxu0 %v2780_v20 }
 0x22d   :  { %2200 = vmatprep.mubr.bf16.mxu0 %v894_v23  ;;  %2595 = vmatprep.subr.bf16.mxu1 %v2781_v9 }
 0x22e   :  { %2605 = vmatprep.subr.bf16.mxu0 %v2782_v22  ;;  %v2876_v58 = vpop.eup %2875 }
 0x22f   :  { %v893_v61 = vpack.c.bf16 %v2876_v58, %v2876_v58  ;;  %v2878_v2 = vpop.eup %2877 }
 0x230   :  { %2596 = vmatpush3.bf16.msra.mxu1 %v2783_v10  ;;  %2606 = vmatpush3.bf16.msra.mxu0 %v2784_v24  ;;  %v895_v3 = vpack.c.bf16 %v2878_v2, %v2878_v2 }
 0x231   :  { %2607 = vmatprep.subr.bf16.mxu0 %v2785_v25  ;;  %2625 = vmatprep.subr.bf16.mxu1 %v2786_v26 }
 0x233   :  { %2161 = vmatmul.mubr.bf16.vlgmr.msra.gmra.mxu1 %v891_v27 }
 0x234   :  { %2608 = vmatpush3.bf16.msra.mxu0 %v2787_v29  ;;  %2626 = vmatpush3.bf16.msra.mxu1 %v2788_v45 }
 0x235   :  { %2240 = vmatprep.mubr.bf16.mxu1 %v896_v33  ;;  %2609 = vmatprep.subr.bf16.mxu0 %v2789_v16 }
 0x236   :  { %2627 = vmatprep.subr.bf16.mxu1 %v2790_v12 }
 0x238   :  { %2610 = vmatpush3.bf16.msra.mxu0 %v2791_v34  ;;  %2628 = vmatpush3.bf16.msra.mxu1 %v2792_v35 }
 0x239   :  { %2611 = vmatprep.subr.bf16.mxu0 %v2793_v32  ;;  %2629 = vmatprep.subr.bf16.mxu1 %v2794_v38 }
 0x23c   :  { %2612 = vmatpush3.bf16.msra.mxu0 %v2795_v39  ;;  %2630 = vmatpush3.bf16.msra.mxu1 %v2796_v40 }
 0x23d   :  { %2613 = vmatprep.subr.bf16.mxu0 %v2797_v41  ;;  %2631 = vmatprep.subr.bf16.mxu1 %v2798_v42 }
 0x240   :  { %2614 = vmatpush3.bf16.msra.mxu0 %v2799_v43  ;;  %2632 = vmatpush3.bf16.msra.mxu1 %v2800_v44 }
 0x241   :  { %2615 = vmatprep.subr.bf16.mxu0 %v2801_v47  ;;  %2633 = vmatprep.subr.bf16.mxu1 %v2802_v48 }
 0x244   :  { %2616 = vmatpush3.bf16.msra.mxu0 %v2803_v49  ;;  %2634 = vmatpush3.bf16.msra.mxu1 %v2804_v50 }
 0x245   :  { %2617 = vmatprep.subr.bf16.mxu0 %v2805_v51  ;;  %2635 = vmatprep.subr.bf16.mxu1 %v2806_v52 }
 0x248   :  { %2618 = vmatpush3.bf16.msra.mxu0 %v2807_v53  ;;  %2636 = vmatpush3.bf16.msra.mxu1 %v2808_v55 }
 0x249   :  { %2637 = vmatprep.subr.bf16.mxu1 %v2809_v56 }
 0x24b   :  { %2201 = vmatmul.mubr.bf16.vlgmr.msra.gmra.mxu0 %v893_v61 }
 0x24c   :  { %2638 = vmatpush3.bf16.msra.mxu1 %v2810_v60 }
 0x24d   :  { %2639 = vmatprep.subr.bf16.mxu1 %v2811_v62 }
 0x250   :  { %2640 = vmatpush3.bf16.msra.mxu1 %v2812_v63 }
 0x253   :  { %2241 = vmatmul.mubr.bf16.vlgmr.msra.gmra.mxu1 %v895_v3 }
 0x2ab   :  { %v2487_v5 = vpop.f32.mrf.mxu0 }
 0x2ad   :  { %v2488_v6 = vpop.f32.mrf.mxu0 }
 0x2ae   :  { %v2489_v7 = vadd.f32 %v2488_v6, %v2487_v5 }
 0x2af   :  { %v2490_v8 = vpop.f32.mrf.mxu0 }
 0x2b0   :  { %v1963_v15 = vadd.f32 %v2489_v7, %v2333_v1 }
 0x2b1   :  { %v2491_v11 = vpop.f32.mrf.mxu0 }
 0x2b3   :  { %v2509_v14 = vpop.f32.mrf.mxu1 }
 0x2b5   :  { %v2510_v13 = vpop.f32.mrf.mxu1 }
 0x2b6   :  { %v2511_v17 = vadd.f32 %v2510_v13, %v2509_v14 }
 0x2b7   :  { %v2512_v36 = vpop.f32.mrf.mxu1 }
 0x2b8   :  { %v2003_v18 = vadd.f32 %v2511_v17, %v1963_v15 }
 0x2b9   :  { %v2513_v19 = vpop.f32.mrf.mxu1 }
 0x2cb   :  { %v2531_v54 = vpop.f32.mrf.mxu0 }
 0x2cd   :  { %v2532_v0 = vpop.f32.mrf.mxu0 }
 0x2ce   :  { %v2533_v28 = vadd.f32 %v2532_v0, %v2531_v54 }
 0x2cf   :  { %v2534_v20 = vpop.f32.mrf.mxu0 }
 0x2d0   :  { %v2043_v30 = vadd.f32 %v2533_v28, %v2003_v18 }
 0x2d1   :  { %v2535_v21 = vpop.f32.mrf.mxu0 }
 0x2d3   :  { %v2553_v9 = vpop.f32.mrf.mxu1 }
 0x2d5   :  { %v2554_v22 = vpop.f32.mrf.mxu1 }
 0x2d6   :  { %v2555_v31 = vadd.f32 %v2554_v22, %v2553_v9 }
 0x2d7   :  { %v2556_v23 = vpop.f32.mrf.mxu1 }
 0x2d8   :  { %v2083_v35 = vadd.f32 %v2555_v31, %v2043_v30 }
 0x2d9   :  { %v2557_v10 = vpop.f32.mrf.mxu1 }
 0x2eb   :  { %v2575_v24 = vpop.f32.mrf.mxu0 }
 0x2ed   :  { %v2576_v25 = vpop.f32.mrf.mxu0 }
 0x2ee   :  { %v2577_v33 = vadd.f32 %v2576_v25, %v2575_v24 }
 0x2ef   :  { %v2578_v26 = vpop.f32.mrf.mxu0 }
 0x2f0   :  { %v2123_v38 = vadd.f32 %v2577_v33, %v2083_v35 }
 0x2f1   :  { %v2579_v4 = vpop.f32.mrf.mxu0 }
 0x2f3   :  { %v2597_v57 = vpop.f32.mrf.mxu1 }
 0x2f5   :  { %v2598_v29 = vpop.f32.mrf.mxu1 }
 0x2f6   :  { %v2599_v37 = vadd.f32 %v2598_v29, %v2597_v57 }
 0x2f7   :  { %v2600_v45 = vpop.f32.mrf.mxu1 }
 0x2f8   :  { %v2163_v41 = vadd.f32 %v2599_v37, %v2123_v38 }
 0x2f9   :  { %v2601_v27 = vpop.f32.mrf.mxu1 }
 0x30b   :  { %v2619_v16 = vpop.f32.mrf.mxu0 }
 0x30d   :  { %v2620_v12 = vpop.f32.mrf.mxu0 }
 0x30e   :  { %v2621_v39 = vadd.f32 %v2620_v12, %v2619_v16 }
 0x30f   :  { %v2622_v34 = vpop.f32.mrf.mxu0 }
 0x310   :  { %v2203_v59 = vadd.f32 %v2621_v39, %v2163_v41 }
 0x311   :  { %v2623_v32 = vpop.f32.mrf.mxu0 }
 0x313   :  { %v2641_v40 = vpop.f32.mrf.mxu1 }
 0x315   :  { %v2642_v42 = vpop.f32.mrf.mxu1 }
 0x316   :  { %v2643_v43 = vadd.f32 %v2642_v42, %v2641_v40 }
 0x317   :  { %v2644_v44 = vpop.f32.mrf.mxu1 }
 0x318   :  { %v2243_v46 = vadd.f32 %v2643_v43, %v2203_v59 }
 0x319   :  { %v2645_v47 = vpop.f32.mrf.mxu1 }
 0x31a   :  { %2248 = vst [vmem:[#allocation7] sm:$0xff] %v2243_v46 }
 0x31b   :  { %2930 = shalt.err (!%p2927_p0)
}
 0x31c   :  { %2258 = dma.vmem_to_hbm [thread:$0]  %s2256_s29, 128, %s3145_s6, [#allocation4]  }
 0x31d   :  { %2943 = dma.done.wait [#allocation4], 128  }
 0x31e   :  { %2944 = vsyncadd [#allocation4], 4294967168 }
 0x31f   :  { %2262 = vsyncpa [#allocation3], 1 }
 0x320   :  { %2263 = vsyncpa [#allocation6], 1 }
 0x321   :  { %2264 = vsyncpa [#allocation4], 1 }

</bundles_post_ra>
